<compile_context>
chip_gen: v6e
topology: v6e:2x2x1
jax: 0.10.0
libtpu: 0.0.40
codegen_flags: <defaults>
</compile_context>

<pallas_src>
import jax
import jax.numpy as jnp
from jax.experimental import pallas as pl
from jax.experimental.pallas import tpu as pltpu


# ---------------------------------------------------------------------------
# Config (mirrors Feature.__init__ arguments of the concrete feature).
# ---------------------------------------------------------------------------
_CONFIG = dict(
    sample_rate=128,
    window_size=32,
    frame_rate=16,
    center=True,
    feat_dim=16,
)
_CONFIG["hop_size"] = _CONFIG["sample_rate"] // _CONFIG["frame_rate"]

# Frames fused per matmul row.  Keep SMALL: fused-weight bytes grow ~F^2 and
# FLOP inflation grows ~F (perf review).  F=16 -> S = 128 (ideal K for the
# v5e 128x128 MXU) and N = 256 output lanes.
_FRAMES_PER_BLOCK = 16

# Row-tile (matmul M) size.  256 suits v6e/v7x; use 128 on v5e; up to 512-1024
# on v6e (128 MiB VMEM) for very long audio.  Shrunk automatically for tiny
# inputs.
_TM_MAX = 256


def _round_up(a: int, b: int) -> int:
    return (a + b - 1) // b * b


# ---------------------------------------------------------------------------
# Kernel: one row tile = one MXU matmul.
#   rows_ref : (TM, S_pad) bf16   overlapping audio rows
#   wf_ref   : (S_pad, N)  bf16   fused framing/window/filterbank matrix (resident)
#   out_ref  : (TM, N)     f32    N = F * feat_dim (lane-dense, multiple of 128)
# ---------------------------------------------------------------------------
def _feature_kernel(rows_ref, wf_ref, out_ref):
    out_ref[...] = jnp.dot(
        rows_ref[...], wf_ref[...], preferred_element_type=jnp.float32
    ).astype(out_ref.dtype)


# ---------------------------------------------------------------------------
# Weight preparation (wrapper-side, tiny, built ONCE and reused every call):
# fold Hann into the filterbank and bake the hop-shifted framing into a single
# (S_pad, N) matrix.
# ---------------------------------------------------------------------------
def build_fused_weights(hann, w):
    W = hann.shape[-1]
    feat_dim = w.shape[-1]
    hop = _CONFIG["hop_size"]
    F = _FRAMES_PER_BLOCK
    S = F * hop
    S_pad = _round_up(S + W - hop, 128)          # 256 for this config (== 2*S)

    w_eff = hann[:, None] * w                    # Hann folded into filterbank (W, feat)
    r = jnp.arange(S_pad)[:, None]               # sample within row
    f = jnp.arange(F)[None, :]                   # frame within block
    rel = r - f * hop                            # tap index of sample r in frame f
    valid = (rel >= 0) & (rel < W)
    g = w_eff[jnp.clip(rel, 0, W - 1)]           # (S_pad, F, feat_dim)
    g = jnp.where(valid[..., None], g, 0.0)
    return g.reshape(S_pad, F * feat_dim).astype(jnp.bfloat16)


# ---------------------------------------------------------------------------
# Pallas call wrapper
# ---------------------------------------------------------------------------
def _pallas_compute_feature(x, wf, n_frames):
    """x: (B, L) center-padded audio -> (B, n_frames, feat_dim) float32."""
    B, L = x.shape
    hop = _CONFIG["hop_size"]
    feat_dim = _CONFIG["feat_dim"]
    F = _FRAMES_PER_BLOCK
    S = F * hop
    S_pad, N = wf.shape
    assert S_pad == 2 * S, "row layout below assumes S_pad == 2*S for this config"

    n_blocks = pl.cdiv(n_frames, F)
    # Pad so the lookahead half of the last block's row stays in bounds.
    t_total = (n_blocks + 1) * S
    x = jnp.pad(x.astype(jnp.bfloat16), ((0, 0), (0, max(0, t_total - L))))

    # Overlapping rows via pure reshapes (no gather, no second input stream):
    # row (b, j) = x[b, j*S : j*S + 2*S].
    chunks = x.reshape(B, n_blocks + 1, S)
    rows = jnp.concatenate([chunks[:, :-1], chunks[:, 1:]], axis=-1)
    rows = rows.reshape(B * n_blocks, S_pad)

    R = rows.shape[0]
    TM = min(_TM_MAX, _round_up(R, 16))          # 16: bf16 sublane packing
    n_tiles = pl.cdiv(R, TM)
    R_pad = n_tiles * TM
    rows = jnp.pad(rows, ((0, R_pad - R), (0, 0)))

    grid_spec = pl.GridSpec(
        grid=(n_tiles,),
        in_specs=[
            # Streamed audio rows: pipelined/double-buffered by Pallas.
            pl.BlockSpec((TM, S_pad), lambda i: (i, 0)),
            # Fused framing matrix: whole array, single VMEM resident.
            pl.BlockSpec(memory_space=pltpu.MemorySpace.VMEM),
        ],
        out_specs=pl.BlockSpec((TM, N), lambda i: (i, 0)),   # lane-dense output slab
    )

    cost = pl.CostEstimate(
        flops=2 * R_pad * S_pad * N,
        transcendentals=0,
        bytes_accessed=R_pad * S_pad * 2 + S_pad * N * 2 + R_pad * N * 4,
    )

    out = pl.pallas_call(
        _feature_kernel,
        out_shape=jax.ShapeDtypeStruct((R_pad, N), jnp.float32),
        grid_spec=grid_spec,
        compiler_params=pltpu.CompilerParams(
            dimension_semantics=("parallel",),   # row tiles shardable across TCs (v7x)
        ),
        cost_estimate=cost,
    )(rows, wf)

    # Layout plumbing only: drop padded rows/frames, expose (n_frames, feat_dim).
    return out[:R].reshape(B, n_blocks * F, feat_dim)[:, :n_frames]


# ---------------------------------------------------------------------------
# Module-equivalent wrapper (glue in plain JAX)
# ---------------------------------------------------------------------------
def make_params():
    """Deterministic parameters implied by Feature.__init__ + the concrete feature."""
    W = _CONFIG["window_size"]
    Fd = _CONFIG["feat_dim"]
    n = jnp.arange(W, dtype=jnp.float32)
    hann = 0.5 - 0.5 * jnp.cos(2.0 * jnp.pi * n / W)                     # (W,)
    k = jnp.arange(Fd, dtype=jnp.float32)
    filterbank = jnp.cos(jnp.pi / W * (n[:, None] + 0.5) * k[None, :]) / jnp.sqrt(W)
    # `cache` buffer from __init__ (only used by the streaming branch).
    cache = jnp.zeros((1, W // 2 if _CONFIG["center"] else 0), jnp.float32)
    return hann.astype(jnp.float32), filterbank.astype(jnp.float32), cache


def feature_forward(audio, wf, sample_rate=None):
    """Mirrors Feature.forward (non-streaming path).

    audio: ((batch,) time), wf: fused weights from build_fused_weights (built once).
    Returns ((batch,) n_frames, feat_dim) float32.
    """
    input_ndim = audio.ndim
    if input_ndim == 1:
        audio = audio[None, :]

    # NOTE: the original resample branch `sample_rate is not None and
    # sample_rate != sample_rate` is always False (dead code), so no resample.
    # TODO(synk): streaming branch (stateful `cache` buffer update) not
    # implemented — it mutates module state, which has no Pallas equivalent.
    if _CONFIG["center"]:
        pad = _CONFIG["window_size"] // 2
        x = jnp.pad(audio, ((0, 0), (pad, pad)))
    else:
        x = audio

    W, hop = _CONFIG["window_size"], _CONFIG["hop_size"]
    n_frames = (x.shape[-1] - W) // hop + 1

    feat = _pallas_compute_feature(x, wf, n_frames)

    if input_ndim == 1:
        feat = feat[0]
    return feat


# Pure-JAX reference (un-fused framing path) for verification.
def _reference_forward(audio, w_eff):
    input_ndim = audio.ndim
    if input_ndim == 1:
        audio = audio[None, :]
    pad = _CONFIG["window_size"] // 2
    x = jnp.pad(audio, ((0, 0), (pad, pad)))
    W, hop = _CONFIG["window_size"], _CONFIG["hop_size"]
    n_frames = (x.shape[-1] - W) // hop + 1
    frames = jnp.stack([x[:, f * hop : f * hop + W] for f in range(n_frames)], axis=1)
    feat = jnp.einsum("btw,wf->btf", frames, w_eff, precision=jax.lax.Precision.HIGHEST)
    if input_ndim == 1:
        feat = feat[0]
    return feat


if __name__ == "__main__":
    key = jax.random.PRNGKey(0)
    B, T = 2, _CONFIG["sample_rate"]  # one second of audio per example
    audio = jax.random.normal(key, (B, T), dtype=jnp.float32)

    hann, filterbank, _cache = make_params()
    # Hoisted out of the per-call path: fused weights built once, reused.
    wf = build_fused_weights(hann, filterbank)

    fwd = jax.jit(lambda a: feature_forward(a, wf))
    out = jax.block_until_ready(fwd(audio))

    # Tight check: reference fed the SAME bf16-rounded audio/weights (f32 math)
    # -> isolates framing/matmul correctness from quantization.
    audio_q = audio.astype(jnp.bfloat16).astype(jnp.float32)
    w_eff_q = (hann[:, None] * filterbank).astype(jnp.bfloat16).astype(jnp.float32)
    ref_q = _reference_forward(audio_q, w_eff_q)

    # Loose check vs the full-precision reference: documents bf16-in / f32-acc error.
    ref = _reference_forward(audio, hann[:, None] * filterbank)

    assert out.shape == ref.shape, (out.shape, ref.shape)
    err_q = float(jnp.max(jnp.abs(out - ref_q)))
    assert jnp.allclose(out, ref_q, atol=1e-3, rtol=1e-3), err_q
    err = float(jnp.max(jnp.abs(out - ref)))
    assert jnp.allclose(out, ref, atol=2e-2, rtol=2e-2), err

    print("KERNEL_OK")
</pallas_src>

<mosaic_0001>
module attributes {stable_mosaic.version = 11 : i64} {
  func.func @_feature_kernel(%arg0: i32, %arg1: memref<16x256xbf16, #tpu.memory_space<vmem>>, %arg2: memref<256x256xbf16, #tpu.memory_space<vmem>>, %arg3: memref<16x256xf32, #tpu.memory_space<vmem>>) attributes {dimension_semantics = [#tpu.dimension_semantics<parallel>], iteration_bounds = array<i64: 1>, scalar_prefetch = 0 : i64, scratch_operands = 0 : i64, tpu.core_type = #tpu.core_type<tc>, window_params = [{transform_indices = @transform_0, window_bounds = array<i64: 16, 256>}, {pipeline_mode = #tpu.pipeline_mode<synchronous>, transform_indices = @transform_1, window_bounds = array<i64: 256, 256>}, {transform_indices = @transform_2, window_bounds = array<i64: 16, 256>}]} {
    %c0 = arith.constant 0 : index
    %c0_0 = arith.constant 0 : index
    %0 = vector.load %arg1[%c0, %c0_0] : memref<16x256xbf16, #tpu.memory_space<vmem>>, vector<16x256xbf16>
    %c0_1 = arith.constant 0 : index
    %c0_2 = arith.constant 0 : index
    %1 = vector.load %arg2[%c0_1, %c0_2] : memref<256x256xbf16, #tpu.memory_space<vmem>>, vector<256x256xbf16>
    %cst = arith.constant dense<0.000000e+00> : vector<16x256xf32>
    %2 = tpu.matmul %0, %1, %cst {dimension_numbers = #tpu.dot_dimension_numbers<[1], [0], [0], [1], [0, 0, 1, 1], [], []>} : vector<16x256xbf16>, vector<256x256xbf16>, vector<16x256xf32> -> vector<16x256xf32>
    %c0_3 = arith.constant 0 : index
    %c0_4 = arith.constant 0 : index
    %3 = vector.load %arg3[%c0_3, %c0_4] : memref<16x256xf32, #tpu.memory_space<vmem>>, vector<16x256xf32>
    tpu.vector_store %arg3[%c0_3, %c0_4], %2 {strides = array<i32>} : memref<16x256xf32, #tpu.memory_space<vmem>>, vector<16x256xf32>,
    return
  }
  func.func @transform_0(%arg0: i32) -> (i32, i32) {
    %c0_i32 = arith.constant 0 : i32
    %c0_i32_0 = arith.constant 0 : i32
    return %arg0, %c0_i32 : i32, i32
  }
  func.func @transform_1(%arg0: i32) -> (i32, i32) {
    %c0_i32 = arith.constant 0 : i32
    %c0_i32_0 = arith.constant 0 : i32
    %c0_i32_1 = arith.constant 0 : i32
    return %c0_i32, %c0_i32_0 : i32, i32
  }
  func.func @transform_2(%arg0: i32) -> (i32, i32) {
    %c0_i32 = arith.constant 0 : i32
    %c0_i32_0 = arith.constant 0 : i32
    return %arg0, %c0_i32 : i32, i32
  }
}

</mosaic_0001>

<bundles_post_ra>
// kernel: _lambda_.1
= control target key start
LH: loop header
LB: loop body
LE: loop exit
PB: predicated region body
PF: predicated region fallthrough
CT: control target
= control target key end

     0   :  { %7 = vsyncpa [#allocation3], 0  ;;  %s391_s9 = smov [#allocation2]   ;;  %s430_s0 = inlined_call_operand.vmem [shape: bf16[16,256], index: 0, kind: input, shape index: {}]   ;;  %s431_s1 = inlined_call_operand.hbm [shape: bf16[256,256], index: 1, kind: input, shape index: {}]   ;;  %s432_s2 = inlined_call_operand.vmem [shape: f32[16,256], index: 2, kind: output, shape index: {}]  }
   0x1   :  { %s15_s10 = sshll.u32 %s391_s9, 4  ;;  %s16_s10 = int_to_ptr.vmem [resolvable:$true] %s15_s10 }
   0x2   :  { %s377_s11 = scalar_lea.vmem %s16_s10, 4096  ;;  %p382_p1 = scmp.lt.s32.totalorder %s16_s10, %s16_s10 }
   0x3   :  { %p378_p0 = scmp.ne.s32.totalorder %s16_s10, %s377_s11  ;;  %p383_p2 = scmp.lt.s32.totalorder %s377_s11, %s377_s11 }
   0x5   :  { %p384_p3 = por %p383_p2, %p382_p1 }
   0x7   :  { %p385_p4 = pnand %p384_p3, %p378_p0 }
   0x9   :  { %388 = shalt.err (!%p385_p4)
}
   0xa   :  { %s392_s12 = smov 128   ;;  %s393_s13 = smov 8  }
   0xb   :  { %21 = dma.hbm_to_vmem [thread:$0]  %s431_s1, 4096, %s16_s10, [#allocation3], %s392_s12, %s392_s12, %s393_s13  }
   0xc   :  { %389 = dma.done.wait [#allocation3], 4096  }
   0xd   :  { %390 = vsyncadd [#allocation3], 4294963200  ;;  %v318_v0 = vld [vmem:[#allocation2 + $0x74] ss:$8 sps:$4 sm:$0xff]   ;;  %v320_v1 = vld [vmem:[#allocation2 + $0x70] ss:$8 sps:$4 sm:$0xff]  }
   0xe   :  { %229 = vmatprep.subr.bf16.mxu0 %v318_v0  ;;  %v321_v2 = vld [vmem:[#allocation2 + $0x64] ss:$8 sps:$4 sm:$0xff]   ;;  %v323_v3 = vld [vmem:[#allocation2 + $0x60] ss:$8 sps:$4 sm:$0xff]   ;;  %v324_v4 = vld [vmem:[#allocation2 + $0x54] ss:$8 sps:$4 sm:$0xff]  }
   0xf   :  { %230 = vmatpush1.bf16.msra.mxu0 %v320_v1  ;;  %v326_v5 = vld [vmem:[#allocation2 + $0x50] ss:$8 sps:$4 sm:$0xff]   ;;  %v327_v6 = vld [vmem:[#allocation2 + $0x44] ss:$8 sps:$4 sm:$0xff]   ;;  %v329_v7 = vld [vmem:[#allocation2 + $0x40] ss:$8 sps:$4 sm:$0xff]  }
  0x10   :  { %231 = vmatprep.subr.bf16.mxu0 %v321_v2  ;;  %v330_v8 = vld [vmem:[#allocation2 + $0x34] ss:$8 sps:$4 sm:$0xff]   ;;  %v332_v9 = vld [vmem:[#allocation2 + $0x30] ss:$8 sps:$4 sm:$0xff]   ;;  %v333_v10 = vld [vmem:[#allocation2 + $0x24] ss:$8 sps:$4 sm:$0xff]  }
  0x11   :  { %v335_v11 = vld [vmem:[#allocation2 + $0x20] ss:$8 sps:$4 sm:$0xff]   ;;  %v336_v12 = vld [vmem:[#allocation2 + $0x14] ss:$8 sps:$4 sm:$0xff]   ;;  %v368_v13 = vld [vmem:[%s430_s0 + $0x4] ss:$8 sps:$4 sm:$0xff]  }
  0x12   :  { %v338_v14 = vld [vmem:[#allocation2 + $0x10] ss:$8 sps:$4 sm:$0xff]   ;;  %v339_v15 = vld [vmem:[#allocation2 + $0x4] ss:$8 sps:$4 sm:$0xff]   ;;  %261 = vmatprep.mubr.bf16.mxu0 %v368_v13  ;;  %v341_v16 = vld [vmem:[#allocation2] ss:$8 sps:$4 sm:$0xff]  }
  0x13   :  { %232 = vmatpush1.bf16.msra.mxu0 %v323_v3  ;;  %v342_v17 = vld [vmem:[#allocation2 + $0xf4] ss:$8 sps:$4 sm:$0xff]   ;;  %v344_v18 = vld [vmem:[#allocation2 + $0xf0] ss:$8 sps:$4 sm:$0xff]   ;;  %v345_v19 = vld [vmem:[#allocation2 + $0xe4] ss:$8 sps:$4 sm:$0xff]  }
  0x14   :  { %233 = vmatprep.subr.bf16.mxu0 %v324_v4  ;;  %v347_v20 = vld [vmem:[#allocation2 + $0xe0] ss:$8 sps:$4 sm:$0xff]   ;;  %v348_v21 = vld [vmem:[#allocation2 + $0xd4] ss:$8 sps:$4 sm:$0xff]   ;;  %v350_v22 = vld [vmem:[#allocation2 + $0xd0] ss:$8 sps:$4 sm:$0xff]  }
  0x15   :  { %v351_v23 = vld [vmem:[#allocation2 + $0xc4] ss:$8 sps:$4 sm:$0xff]   ;;  %v353_v24 = vld [vmem:[#allocation2 + $0xc0] ss:$8 sps:$4 sm:$0xff]   ;;  %v354_v25 = vld [vmem:[#allocation2 + $0xb4] ss:$8 sps:$4 sm:$0xff]  }
  0x16   :  { %v356_v26 = vld [vmem:[#allocation2 + $0xb0] ss:$8 sps:$4 sm:$0xff]   ;;  %v357_v27 = vld [vmem:[#allocation2 + $0xa4] ss:$8 sps:$4 sm:$0xff]   ;;  %v359_v28 = vld [vmem:[#allocation2 + $0xa0] ss:$8 sps:$4 sm:$0xff]  }
  0x17   :  { %234 = vmatpush1.bf16.msra.mxu0 %v326_v5  ;;  %v360_v29 = vld [vmem:[#allocation2 + $0x94] ss:$8 sps:$4 sm:$0xff]   ;;  %v362_v30 = vld [vmem:[#allocation2 + $0x90] ss:$8 sps:$4 sm:$0xff]   ;;  %v363_v31 = vld [vmem:[#allocation2 + $0x84] ss:$8 sps:$4 sm:$0xff]  }
  0x18   :  { %235 = vmatprep.subr.bf16.mxu0 %v327_v6  ;;  %v365_v32 = vld [vmem:[#allocation2 + $0x80] ss:$8 sps:$4 sm:$0xff]  }
  0x19   :  { %v366_v33 = vld [vmem:[%s430_s0] ss:$8 sps:$4 sm:$0xff]  }
  0x1b   :  { %236 = vmatpush1.bf16.msra.mxu0 %v329_v7 }
  0x1c   :  { %237 = vmatprep.subr.bf16.mxu0 %v330_v8 }
  0x1f   :  { %238 = vmatpush1.bf16.msra.mxu0 %v332_v9 }
  0x20   :  { %239 = vmatprep.subr.bf16.mxu0 %v333_v10 }
  0x23   :  { %240 = vmatpush1.bf16.msra.mxu0 %v335_v11 }
  0x24   :  { %241 = vmatprep.subr.bf16.mxu0 %v336_v12 }
  0x27   :  { %242 = vmatpush1.bf16.msra.mxu0 %v338_v14 }
  0x28   :  { %243 = vmatprep.subr.bf16.mxu0 %v339_v15 }
  0x2b   :  { %244 = vmatpush1.bf16.msra.mxu0 %v341_v16 }
  0x2c   :  { %245 = vmatprep.subr.bf16.mxu0 %v342_v17 }
  0x2f   :  { %246 = vmatpush2.bf16.msra.mxu0 %v344_v18 }
  0x30   :  { %247 = vmatprep.subr.bf16.mxu0 %v345_v19 }
  0x33   :  { %248 = vmatpush2.bf16.msra.mxu0 %v347_v20 }
  0x34   :  { %249 = vmatprep.subr.bf16.mxu0 %v348_v21 }
  0x37   :  { %250 = vmatpush2.bf16.msra.mxu0 %v350_v22 }
  0x38   :  { %251 = vmatprep.subr.bf16.mxu0 %v351_v23 }
  0x3b   :  { %252 = vmatpush2.bf16.msra.mxu0 %v353_v24 }
  0x3c   :  { %253 = vmatprep.subr.bf16.mxu0 %v354_v25 }
  0x3f   :  { %254 = vmatpush2.bf16.msra.mxu0 %v356_v26 }
  0x40   :  { %255 = vmatprep.subr.bf16.mxu0 %v357_v27 }
  0x43   :  { %256 = vmatpush2.bf16.msra.mxu0 %v359_v28 }
  0x44   :  { %257 = vmatprep.subr.bf16.mxu0 %v360_v29 }
  0x47   :  { %258 = vmatpush2.bf16.msra.mxu0 %v362_v30 }
  0x48   :  { %259 = vmatprep.subr.bf16.mxu0 %v363_v31 }
  0x4b   :  { %260 = vmatpush2.bf16.msra.mxu0 %v365_v32 }
  0x4e   :  { %262 = vmatmul.mubr.bf16.vlgmr.msra.gmra.mxu0 %v366_v33 }
 0x10e   :  { %v263_v34 = vpop.f32.mrf.mxu0 }
 0x10f   :  { %272 = vst [vmem:[%s432_s2] sm:$0xff] %v263_v34 }
 0x110   :  { %v265_v35 = vpop.f32.mrf.mxu0 }
 0x111   :  { %273 = vst [vmem:[%s432_s2 + $0x8] sm:$0xff] %v265_v35 }
 0x112   :  { %v267_v36 = vpop.f32.mrf.mxu0 }
 0x113   :  { %274 = vst [vmem:[%s432_s2 + $0x10] sm:$0xff] %v267_v36 }
 0x114   :  { %v269_v37 = vpop.f32.mrf.mxu0 }
 0x115   :  { %275 = vst [vmem:[%s432_s2 + $0x18] sm:$0xff] %v269_v37 }
 0x116   :  { %280 = vsyncpa [#allocation3], 1 }

</bundles_post_ra>
